<compile_context>
chip_gen: v7x
topology: tpu7x:2x2x1
jax: 0.10.0
libtpu: 0.0.40
codegen_flags: <defaults>
</compile_context>

<pallas_src>
import functools
import math

import jax
import jax.numpy as jnp
from jax.experimental import pallas as pl
from jax.experimental.pallas import tpu as pltpu

# Explicit VMEM budget: above the default scoped limit, below v7x's 64 MiB/TC.
VMEM_LIMIT_BYTES = 48 * 1024 * 1024


def _pick_tile(dim, target):
    """MXU-friendly tile if it divides the dim, else the full dim (always legal)."""
    return target if dim % target == 0 else dim


# ----------------------- fused / tiled batched linear ------------------------

def _batched_linear_kernel(x_ref, w_ref, b_ref, o_ref, acc_ref, *, compute_dtype):
    # x: (1, tm, tk), w: (1, tk, tn), b: (1, 1, tn), o: (1, tm, tn), acc: (tm, tn) f32
    k = pl.program_id(3)

    @pl.when(k == 0)
    def _init():
        acc_ref[...] = jnp.zeros_like(acc_ref)

    x = x_ref[0].astype(compute_dtype)
    w = w_ref[0].astype(compute_dtype)
    acc_ref[...] += jnp.dot(x, w, preferred_element_type=jnp.float32)

    @pl.when(k == pl.num_programs(3) - 1)
    def _finalize():
        o_ref[0] = (acc_ref[...] + b_ref[0]).astype(o_ref.dtype)


def batched_linear_pallas(x, w, b, *, compute_dtype=jnp.float32,
                          tm_target=256, tn_target=256, tk_target=256):
    """x: (P, M, K), w: (P, K, N), b: (P, 1, N) -> (P, M, N) float32.

    One pallas_call covers P independent linear layers (P=3 fuses Q/K/V)."""
    P, M, K = x.shape
    _, _, N = w.shape
    tm = _pick_tile(M, tm_target)
    tn = _pick_tile(N, tn_target)
    tk = _pick_tile(K, tk_target)
    grid = (P, M // tm, N // tn, K // tk)
    kernel = functools.partial(_batched_linear_kernel, compute_dtype=compute_dtype)
    return pl.pallas_call(
        kernel,
        out_shape=jax.ShapeDtypeStruct((P, M, N), jnp.float32),
        grid_spec=pltpu.PrefetchScalarGridSpec(
            num_scalar_prefetch=0,
            grid=grid,
            in_specs=[
                pl.BlockSpec((1, tm, tk), lambda p, i, j, k: (p, i, k)),
                pl.BlockSpec((1, tk, tn), lambda p, i, j, k: (p, k, j)),
                pl.BlockSpec((1, 1, tn), lambda p, i, j, k: (p, 0, j)),
            ],
            out_specs=pl.BlockSpec((1, tm, tn), lambda p, i, j, k: (p, i, j)),
            scratch_shapes=[pltpu.VMEM((tm, tn), jnp.float32)],
        ),
        compiler_params=pltpu.CompilerParams(
            dimension_semantics=("parallel", "parallel", "parallel", "arbitrary"),
            vmem_limit_bytes=VMEM_LIMIT_BYTES,
        ),
    )(x, w, b)


# --------------------------------- attention ---------------------------------

def _attention_kernel(qkv_ref, o_ref, *, scale, compute_dtype):
    # qkv: (3, 1, H, S, D) -- all heads of one batch element; o: (1, S, H*D)
    qkv = qkv_ref[...]
    _, _, H, S, D = qkv.shape
    q = (qkv[0, 0] * scale).astype(compute_dtype)   # scale folded into q (S*D work)
    k = qkv[1, 0].astype(compute_dtype)
    v = qkv[2, 0].astype(compute_dtype)

    # Contract last dims directly: no explicit k.T / layout shuffle before the MXU.
    s = jnp.einsum("hqd,hkd->hqk", q, k, preferred_element_type=jnp.float32)  # (H,S,S)
    m = jnp.max(s, axis=-1, keepdims=True)
    p = jnp.exp(s - m)
    p = p * pl.reciprocal(jnp.sum(p, axis=-1, keepdims=True), approx=True)
    # dropout(p): identity in eval mode.  # TODO(synk): train-mode dropout.

    o = jnp.einsum("hqk,hkd->hqd", p.astype(compute_dtype), v,
                   preferred_element_type=jnp.float32)                        # (H,S,D)

    # Place each head tile at column-block h of the (S, H*D) output -> the HBM-facing
    # block is lane-dense and no host-side transpose/reshape is needed.
    for h in range(H):  # H is a small static Python int
        o_ref[0, :, h * D:(h + 1) * D] = o[h].astype(o_ref.dtype)


def attention_pallas(qkv, d_k, *, compute_dtype=jnp.float32):
    """qkv: (3, B, H, S, D) -> (B, S, H*D)."""
    _, B, H, S, D = qkv.shape
    scale = 1.0 / math.sqrt(d_k)
    kernel = functools.partial(_attention_kernel, scale=scale,
                               compute_dtype=compute_dtype)
    return pl.pallas_call(
        kernel,
        out_shape=jax.ShapeDtypeStruct((B, S, H * D), jnp.float32),
        grid=(B,),
        in_specs=[pl.BlockSpec((3, 1, H, S, D), lambda b: (0, b, 0, 0, 0))],
        out_specs=pl.BlockSpec((1, S, H * D), lambda b: (b, 0, 0)),
        compiler_params=pltpu.CompilerParams(
            dimension_semantics=("parallel",),
            vmem_limit_bytes=VMEM_LIMIT_BYTES,
        ),
    )(qkv)


# ------------------------------- module wrapper -------------------------------

def init_params(key, num_hidden, num_heads):
    """nn.Linear-style init; Q/K/V weights pre-stacked along a leading axis."""
    d = num_hidden
    hd = num_heads * num_hidden
    keys = jax.random.split(key, 8)

    def lin(kw, kb, fan_in, fan_out):
        bound = 1.0 / math.sqrt(fan_in)
        w = jax.random.uniform(kw, (fan_in, fan_out), jnp.float32, -bound, bound)
        b = jax.random.uniform(kb, (fan_out,), jnp.float32, -bound, bound)
        return w, b

    wq, bq = lin(keys[0], keys[1], d, hd)
    wk, bk = lin(keys[2], keys[3], d, hd)
    wv, bv = lin(keys[4], keys[5], d, hd)
    wo, bo = lin(keys[6], keys[7], hd, d)
    return dict(
        w_qkv=jnp.stack([wq, wk, wv]),              # (3, d, H*d)
        b_qkv=jnp.stack([bq, bk, bv])[:, None, :],  # (3, 1, H*d)
        w_o=wo[None],                               # (1, H*d, d)
        b_o=bo[None, None, :],                      # (1, 1, d)
    )


def multi_head_attention_forward(params, query, key, values,
                                 num_heads, num_hidden, seq_len, d_k,
                                 compute_dtype=jnp.float32):
    B, S, D = query.shape
    H = num_heads
    HD = H * D
    assert S == seq_len and D == num_hidden

    # Fused Q/K/V projection: single tiled pallas_call over all three projections.
    x = jnp.stack([query.reshape(B * S, D),
                   key.reshape(B * S, D),
                   values.reshape(B * S, D)], axis=0)                 # (3, B*S, D)
    qkv = batched_linear_pallas(x, params["w_qkv"], params["b_qkv"],
                                compute_dtype=compute_dtype)          # (3, B*S, H*D)

    # torch `.view(-1, H, S, D)`: pure row-major reinterpretation (no transpose).
    qkv = qkv.reshape(3, B, H, S, D)

    # Attention: all H heads of one batch element per grid step; output emitted
    # directly in (B, S, H*D) layout (lane-dense, no host transpose round-trip).
    attn = attention_pallas(qkv, d_k, compute_dtype=compute_dtype)    # (B, S, H*D)

    # Output projection W_o (same tiled kernel, P=1).
    out = batched_linear_pallas(attn.reshape(1, B * S, HD),
                                params["w_o"], params["b_o"],
                                compute_dtype=compute_dtype)          # (1, B*S, D)
    return out.reshape(B, S, D)


# ------------------------------ reference (JAX) -------------------------------

def reference_forward(params, query, key, values, num_heads, num_hidden, seq_len, d_k):
    B, S, D = query.shape
    H = num_heads
    wq, wk, wv = params["w_qkv"]
    bq, bk, bv = params["b_qkv"][:, 0, :]
    q = (query.reshape(B * S, D) @ wq + bq).reshape(B, H, S, D)
    k = (key.reshape(B * S, D) @ wk + bk).reshape(B, H, S, D)
    v = (values.reshape(B * S, D) @ wv + bv).reshape(B, H, S, D)
    s = jnp.einsum("bhqd,bhkd->bhqk", q, k) / math.sqrt(d_k)
    p = jax.nn.softmax(s, axis=-1)
    o = jnp.einsum("bhqk,bhkd->bhqd", p, v)
    o = o.transpose(0, 2, 1, 3).reshape(B, S, H * D)
    return (o @ params["w_o"][0] + params["b_o"][0, 0]).reshape(B, S, D)


# ------------------------------------ main ------------------------------------

if __name__ == "__main__":
    num_hidden = 32
    num_heads = 4
    seq_len = 8
    d_k = 32
    batch = 2

    root = jax.random.PRNGKey(0)
    kp, kq, kk, kv = jax.random.split(root, 4)

    params = init_params(kp, num_hidden, num_heads)
    query = jax.random.normal(kq, (batch, seq_len, num_hidden), jnp.float32)
    key = jax.random.normal(kk, (batch, seq_len, num_hidden), jnp.float32)
    values = jax.random.normal(kv, (batch, seq_len, num_hidden), jnp.float32)

    ref = reference_forward(params, query, key, values,
                            num_heads, num_hidden, seq_len, d_k)

    # f32 MXU-operand path (default). Tolerance slack only covers the EUP
    # approximate-reciprocal used for the softmax normalization.
    out = multi_head_attention_forward(params, query, key, values,
                                       num_heads, num_hidden, seq_len, d_k)
    out = jax.block_until_ready(out)
    assert out.shape == (batch, seq_len, num_hidden)
    assert jnp.allclose(out, ref, atol=5e-3, rtol=5e-3)

    # bf16 MXU-operand path (what v6e/v7x want for throughput), f32 accumulation.
    out_bf16 = multi_head_attention_forward(params, query, key, values,
                                            num_heads, num_hidden, seq_len, d_k,
                                            compute_dtype=jnp.bfloat16)
    out_bf16 = jax.block_until_ready(out_bf16)
    assert jnp.allclose(out_bf16, ref, atol=5e-2, rtol=5e-2)

    print("KERNEL_OK")
</pallas_src>

<mosaic_0001>
module attributes {stable_mosaic.version = 11 : i64} {
  func.func @_batched_linear_kernel(%arg0: i32, %arg1: i32, %arg2: i32, %arg3: i32, %arg4: memref<1x16x32xf32, #tpu.memory_space<vmem>>, %arg5: memref<1x32x128xf32, #tpu.memory_space<vmem>>, %arg6: memref<1x1x128xf32, #tpu.memory_space<vmem>>, %arg7: memref<1x16x128xf32, #tpu.memory_space<vmem>>, %arg8: memref<16x128xf32, #tpu.memory_space<vmem>>) attributes {dimension_semantics = [#tpu.dimension_semantics<parallel>, #tpu.dimension_semantics<parallel>, #tpu.dimension_semantics<parallel>, #tpu.dimension_semantics<arbitrary>], iteration_bounds = array<i64: 3, 1, 1, 1>, scalar_prefetch = 0 : i64, scratch_operands = 1 : i64, tpu.core_type = #tpu.core_type<tc>, window_params = [{transform_indices = @transform_0, window_bounds = array<i64: 1, 16, 32>}, {transform_indices = @transform_1, window_bounds = array<i64: 1, 32, 128>}, {transform_indices = @transform_2, window_bounds = array<i64: 1, 1, 128>}, {transform_indices = @transform_3, window_bounds = array<i64: 1, 16, 128>}]} {
    %c0_i32 = arith.constant 0 : i32
    %0 = arith.cmpi eq, %arg3, %c0_i32 : i32
    %1 = arith.extui %0 : i1 to i32
    %c0_i32_0 = arith.constant 0 : i32
    %2 = arith.cmpi ne, %1, %c0_i32_0 : i32
    scf.if %2 {
      %cst_12 = arith.constant 0.000000e+00 : f32
      %14 = vector.broadcast %cst_12 : f32 to vector<16x128xf32>
      %c0_13 = arith.constant 0 : index
      %c0_14 = arith.constant 0 : index
      %15 = vector.load %arg8[%c0_13, %c0_14] : memref<16x128xf32, #tpu.memory_space<vmem>>, vector<16x128xf32>
      tpu.vector_store %arg8[%c0_13, %c0_14], %14 {strides = array<i32>} : memref<16x128xf32, #tpu.memory_space<vmem>>, vector<16x128xf32>,
    } else {
    }
    %c0 = arith.constant 0 : index
    %c0_1 = arith.constant 0 : index
    %c0_2 = arith.constant 0 : index
    %3 = vector.load %arg4[%c0, %c0_1, %c0_2] : memref<1x16x32xf32, #tpu.memory_space<vmem>>, vector<1x16x32xf32>
    %4 = vector.shape_cast %3 : vector<1x16x32xf32> to vector<16x32xf32>
    %c0_3 = arith.constant 0 : index
    %c0_4 = arith.constant 0 : index
    %c0_5 = arith.constant 0 : index
    %5 = vector.load %arg5[%c0_3, %c0_4, %c0_5] : memref<1x32x128xf32, #tpu.memory_space<vmem>>, vector<1x32x128xf32>
    %6 = vector.shape_cast %5 : vector<1x32x128xf32> to vector<32x128xf32>
    %c0_6 = arith.constant 0 : index
    %c0_7 = arith.constant 0 : index
    %7 = vector.load %arg8[%c0_6, %c0_7] : memref<16x128xf32, #tpu.memory_space<vmem>>, vector<16x128xf32>
    %cst = arith.constant dense<0.000000e+00> : vector<16x128xf32>
    %8 = tpu.matmul %4, %6, %cst {dimension_numbers = #tpu.dot_dimension_numbers<[1], [0], [0], [1], [0, 0, 1, 1], [], []>} : vector<16x32xf32>, vector<32x128xf32>, vector<16x128xf32> -> vector<16x128xf32>
    %9 = arith.addf %7, %8 : vector<16x128xf32>
    %c0_8 = arith.constant 0 : index
    %c0_9 = arith.constant 0 : index
    %10 = vector.load %arg8[%c0_8, %c0_9] : memref<16x128xf32, #tpu.memory_space<vmem>>, vector<16x128xf32>
    tpu.vector_store %arg8[%c0_8, %c0_9], %9 {strides = array<i32>} : memref<16x128xf32, #tpu.memory_space<vmem>>, vector<16x128xf32>,
    %c0_i32_10 = arith.constant 0 : i32
    %11 = arith.cmpi eq, %arg3, %c0_i32_10 : i32
    %12 = arith.extui %11 : i1 to i32
    %c0_i32_11 = arith.constant 0 : i32
    %13 = arith.cmpi ne, %12, %c0_i32_11 : i32
    scf.if %13 {
      %c0_12 = arith.constant 0 : index
      %c0_13 = arith.constant 0 : index
      %14 = vector.load %arg8[%c0_12, %c0_13] : memref<16x128xf32, #tpu.memory_space<vmem>>, vector<16x128xf32>
      %c0_14 = arith.constant 0 : index
      %c0_15 = arith.constant 0 : index
      %c0_16 = arith.constant 0 : index
      %15 = vector.load %arg6[%c0_14, %c0_15, %c0_16] : memref<1x1x128xf32, #tpu.memory_space<vmem>>, vector<1x1x128xf32>
      %16 = vector.shape_cast %15 : vector<1x1x128xf32> to vector<1x128xf32>
      %17 = vector.broadcast %16 : vector<1x128xf32> to vector<16x128xf32>
      %18 = arith.addf %14, %17 : vector<16x128xf32>
      %c0_17 = arith.constant 0 : index
      %c0_18 = arith.constant 0 : index
      %c0_19 = arith.constant 0 : index
      %19 = vector.load %arg7[%c0_17, %c0_18, %c0_19] : memref<1x16x128xf32, #tpu.memory_space<vmem>>, vector<1x16x128xf32>
      %20 = vector.shape_cast %19 : vector<1x16x128xf32> to vector<16x128xf32>
      %21 = vector.shape_cast %18 : vector<16x128xf32> to vector<1x16x128xf32>
      tpu.vector_store %arg7[%c0_17, %c0_18, %c0_19], %21 {strides = array<i32>} : memref<1x16x128xf32, #tpu.memory_space<vmem>>, vector<1x16x128xf32>,
    } else {
    }
    return
  }
  func.func @transform_0(%arg0: i32, %arg1: i32, %arg2: i32, %arg3: i32) -> (i32, i32, i32) {
    %c0_i32 = arith.constant 0 : i32
    return %arg0, %arg1, %arg3 : i32, i32, i32
  }
  func.func @transform_1(%arg0: i32, %arg1: i32, %arg2: i32, %arg3: i32) -> (i32, i32, i32) {
    %c0_i32 = arith.constant 0 : i32
    return %arg0, %arg3, %arg2 : i32, i32, i32
  }
  func.func @transform_2(%arg0: i32, %arg1: i32, %arg2: i32, %arg3: i32) -> (i32, i32, i32) {
    %c0_i32 = arith.constant 0 : i32
    %c0_i32_0 = arith.constant 0 : i32
    return %arg0, %c0_i32, %arg2 : i32, i32, i32
  }
  func.func @transform_3(%arg0: i32, %arg1: i32, %arg2: i32, %arg3: i32) -> (i32, i32, i32) {
    %c0_i32 = arith.constant 0 : i32
    return %arg0, %arg1, %arg2 : i32, i32, i32
  }
}

</mosaic_0001>

<bundles_post_ra>
// kernel: tpu_custom_call.1
= control target key start
LH: loop header
LB: loop body
LE: loop exit
PB: predicated region body
PF: predicated region fallthrough
CT: control target
= control target key end

     0   :  { %8 = vsyncpa [#allocation4], 0  ;;  %s1098_s0 = inlined_call_operand.hbm [shape: f32[3,16,32], index: 0, kind: input, shape index: {}]   ;;  %s1099_s1 = inlined_call_operand.hbm [shape: f32[3,32,128], index: 1, kind: input, shape index: {}]   ;;  %s1100_s2 = inlined_call_operand.vmem [shape: f32[3,1,128], index: 2, kind: input, shape index: {}]   ;;  %s1101_s3 = inlined_call_operand.hbm [shape: f32[3,16,128], index: 3, kind: output, shape index: {}]  }
   0x1   :  { %10 = vsyncpa [#allocation4 + $0x1], 0 }
   0x2   :  { %11 = vsyncpa [#allocation7], 0 }
   0x3   :  { %13 = vsyncpa [#allocation7 + $0x1], 0 }
   0x4   :  { %14 = vsyncpa [#allocation5], 0 }
   0x5   :  { %16 = vsyncpa [#allocation5 + $0x1], 0  ;;  %s864_s12 = smov 0   ;;  %s866_s13 = smov 0  }
   0x6   :  { %s868_s14 = smov 0   ;;  %s870_s15 = smov 0  }
   0x7   :  { %s872_s16 = smov 0   ;;  %s874_s17 = smov 0  }
   0x8 LB: > { %s568_s18 = sadd.s32 4294967295, %s835_s17   ;;  %s569_s19 = sadd.s32 4294967294, %s835_s17   ;;  %s835_s17 = sphi %s874_s17, %s22_s17   ;;  %s831_s16 = sphi %s872_s16, %s1118_s16   ;;  %s827_s15 = sphi %s870_s15, %s1117_s15   ;;  %s823_s14 = sphi %s868_s14, %s1116_s14   ;;  %s819_s13 = sphi %s866_s13, %s1115_s13   ;;  %s815_s12 = sphi %s864_s12, %s1114_s12  }
   0x9   : > { %s48_s20 = sadd.s32 1, %s831_s16  ;;  %s59_s21 = sadd.s32 1, %s823_s14 }
   0xa   : > { %p50_p0 = scmp.ge.s32.totalorder %s48_s20, 3  ;;  %p66_p1 = scmp.ne.s32.totalorder %s823_s14, %s819_s13 }
   0xb   : > { %p67_p2 = scmp.eq.s32.totalorder %s835_s17, 0  ;;  %p72_p3 = scmp.ne.s32.totalorder %s819_s13, %s815_s12 }
   0xc   : > { %s1120_s20 = smov (%p50_p0, %s48_s20), 0  ;;  %p73_p5 = scmp.eq.s32.totalorder %s568_s18, 0 }
   0xd   : > { %p905_p4 = por %p67_p2, %p66_p1  ;;  %s52_s23 = ssub.s32 %s831_s16, %s1120_s20 }
   0xe   : > { %p158_p6 = scmp.eq.s32.totalorder %s568_s18, 2  ;;  %p57_p7 = scmp.eq.s32.totalorder %s52_s23, 0 }
   0xf   : > { %p911_p8 = por %p73_p5, %p72_p3  ;;  %p164_p10 = scmp.eq.s32.totalorder %s569_s19, 2 }
  0x10   : > { %p915_p9 = por %p158_p6, %p66_p1  ;;  %p635_p12 = scmp.lt.s32.totalorder %s835_s17, 3 }
  0x11   : > { %s1105_s24 = scalar_select %p911_p8, 1, 0 }
  0x12   : > { %s1106_s25 = scalar_select %p915_p9, 1, 0 }
  0x13   : > { %s920_s26 = scalar_select %p57_p7, %s823_s14, %s59_s21  }
  0x14   : > { %p922_p11 = por %p164_p10, %p72_p3  ;;  %s928_s28 = sand.u32 1, %s823_s14  }
  0x15   : > { %s572_s29 = sshll.u32 %s928_s28, 4  ;;  %s590_s30 = sshll.u32 %s831_s16, 8 }
  0x16   : > { %s1107_s27 = scalar_select %p922_p11, 1, 0 }
  0x17   : > { %s935_s6 = scalar_lea.hbm %s1098_s0, %s590_s30  ;;  %s188_s7 = scalar_lea.vmem [#allocation3], %s572_s29 }
  0x18   : > { %s198_s8 = sshll.u32 %s188_s7, 4  ;;  %p941_p13 = pnand %p635_p12, %p905_p4  ;;  %s937_s8 = int_to_ptr.vmem [resolvable:$true] %s198_s8 }
  0x19   : > { %s185_s10 = scalar_lea.sflag [#allocation4], %s928_s28  ;;  %s689_s11 = scalar_lea.hbm %s935_s6, 256 }
  0x1a   : > { %p690_p1 = scmp.ne.s32.totalorder %s935_s6, %s689_s11  ;;  %p691_p2 = pneg %p941_p13 }
  0x1b   : > { %s694_s21 = scalar_lea.hbm %s1098_s0, 768  ;;  %p695_p4 = scmp.lt.u32.totalorder %s935_s6, %s1098_s0 }
  0x1c   : > { %p692_p3 = pnand %p691_p2, %p690_p1  ;;  %p696_p6 = scmp.lt.u32.totalorder %s694_s21, %s689_s11 }
  0x1d   : > { %p698_p10 = scmp.lt.u32.totalorder %s689_s11, %s935_s6 }
  0x1e   : > { %p693_p5 = pneg %p692_p3  ;;  %p697_p7 = por %p696_p6, %p695_p4 }
  0x20   : > { %p699_p12 = por %p698_p10, %p697_p7 }
  0x22   : > { %p700_p0 = pnand %p699_p12, %p693_p5 }
  0x24   : > { %703 = shalt.err (!%p700_p0)
}
  0x25   : > { %s704_s29 = scalar_lea.vmem %s937_s8, 256  ;;  %s837_s30 = smov [#allocation3]  }
  0x26   : > { %p705_p1 = scmp.ne.s32.totalorder %s937_s8, %s704_s29  ;;  %s709_s4 = sshll.u32 %s837_s30, 4  ;;  %s710_s4 = int_to_ptr.vmem [resolvable:$false] %s709_s4 }
  0x27   : > { %s711_s5 = scalar_lea.vmem %s710_s4, 512  ;;  %p712_p9 = scmp.lt.s32.totalorder %s937_s8, %s710_s4 }
  0x28   : > { %p707_p3 = pnand %p705_p1, %p691_p2  ;;  %p713_p4 = scmp.lt.s32.totalorder %s711_s5, %s704_s29 }
  0x2a   : > { %p708_p11 = pneg %p707_p3  ;;  %p714_p6 = por %p713_p4, %p712_p9 }
  0x2c   : > { %p715_p7 = pnand %p714_p6, %p708_p11 }
  0x2e   : > { %718 = shalt.err (!%p715_p7)
}
  0x2f   : > { %s838_s7 = smov 128   ;;  %s839_s11 = smov 8  }
  0x30   : > { %627 = dma.hbm_to_vmem [thread:$0]  (!%p941_p13), %s935_s6, 256, %s937_s8, %s185_s10, %s838_s7, %s838_s7, %s839_s11  }
  0x31   : > { %p239_p9 = scmp.lt.s32.totalorder %s835_s17, 4  ;;  %s575_s18 = sshll.u32 %s928_s28, 5 }
  0x32   : > { %s591_s19 = sshll.u32 %s831_s16, 9  ;;  %p1109_p11 = scmp.ge.s32.totalorder %s835_s17, 1 }
  0x33   : > { %s989_s29 = scalar_lea.hbm %s1099_s1, %s591_s19  ;;  %s212_s30 = scalar_lea.vmem [#allocation6], %s575_s18 }
  0x34   : > { %p982_p0 = pnand %p1109_p11, %p239_p9  ;;  %s222_s4 = sshll.u32 %s212_s30, 4  ;;  %s991_s4 = int_to_ptr.vmem [resolvable:$true] %s222_s4 }
  0x35   : > { %s209_s6 = scalar_lea.sflag [#allocation7], %s928_s28  ;;  %s719_s8 = scalar_lea.hbm %s989_s29, 512 }
  0x36   : > { %p720_p5 = scmp.ne.s32.totalorder %s989_s29, %s719_s8  ;;  %s724_s19 = scalar_lea.hbm %s1099_s1, 1536 }
  0x37   : > { %p725_p1 = scmp.lt.u32.totalorder %s989_s29, %s1099_s1  ;;  %p726_p3 = scmp.lt.u32.totalorder %s724_s19, %s719_s8 }
  0x38   : > { %p722_p10 = pnand %p720_p5, %p691_p2  ;;  %p728_p6 = scmp.lt.u32.totalorder %s719_s8, %s989_s29 }
  0x39   : > { %p727_p4 = por %p726_p3, %p725_p1 }
  0x3a   : > { %p723_p12 = pneg %p722_p10 }
  0x3b   : > { %p729_p7 = por %p728_p6, %p727_p4 }
  0x3d   : > { %p730_p9 = pnand %p729_p7, %p723_p12 }
  0x3f   : > { %733 = shalt.err (!%p730_p9)
}
  0x40   : > { %s734_s18 = scalar_lea.vmem %s991_s4, 512  ;;  %s840_s30 = smov [#allocation6]  }
  0x41   : > { %p735_p11 = scmp.ne.s32.totalorder %s991_s4, %s734_s18  ;;  %s739_s10 = sshll.u32 %s840_s30, 4  ;;  %s740_s10 = int_to_ptr.vmem [resolvable:$false] %s739_s10 }
  0x42   : > { %s741_s5 = scalar_lea.vmem %s740_s10, 1024  ;;  %p742_p8 = scmp.lt.s32.totalorder %s991_s4, %s740_s10 }
  0x43   : > { %p737_p5 = pnand %p735_p11, %p691_p2  ;;  %p743_p1 = scmp.lt.s32.totalorder %s741_s5, %s734_s18 }
  0x45   : > { %p738_p10 = pneg %p737_p5  ;;  %p744_p3 = por %p743_p1, %p742_p8 }
  0x47   : > { %p745_p4 = pnand %p744_p3, %p738_p10 }
  0x49   : > { %748 = shalt.err (!%p745_p4)
}
  0x4a   : > { %630 = dma.hbm_to_vmem [thread:$0]  (!%p941_p13), %s989_s29, 512, %s991_s4, %s209_s6, %s838_s7, %s838_s7, %s839_s11  }
  0x4b   : > { %243 = sbr.rel (%p982_p0) target bundleno = 327 (0x147), region = 32  ;;  %s1025_s8 = sand.u32 (!%p982_p0), 1, %s819_s13  }
  0x4c   : > { %s579_s19 = sshll.u32 (!%p982_p0), %s1025_s8, 4  ;;  %s246_s22 = scalar_lea.sflag (!%p982_p0), [#allocation4], %s1025_s8 }
  0x4d   : > { %s249_s9 = scalar_lea.vmem (!%p982_p0), [#allocation3], %s579_s19  ;;  %p1111_p8 = scmp.ne.s32.totalorder (!%p982_p0), %s1105_s24, 0 }
  0x52   : > { %802 = dma.done.wait (%p1111_p8), %s246_s22, 256  }
  0x53   : > { %804 = vsyncadd (%p1111_p8), %s246_s22, 4294967040  ;;  %s580_s28 = sshll.u32 %s1025_s8, 5  ;;  %s255_s7 = scalar_lea.sflag [#allocation7], %s1025_s8 }
  0x54   : > { %s258_s11 = scalar_lea.vmem [#allocation6], %s580_s28 }
  0x55   : > { %806 = dma.done.wait (%p1111_p8), %s255_s7, 512  }
  0x56   : > { %808 = vsyncadd (%p1111_p8), %s255_s7, 4294966784  ;;  %vm315_vm0 = vcmask 261120   ;;  %v309_v0 = vld [vmem:[%s258_s11] sm:$0xff]  ;;  %v310_v1 = vld [vmem:[%s258_s11 + $0x8] sm:$0xff]  ;;  %p294_p13 = scmp.lt.s32.totalorder %s827_s15, 2  ;;  %s291_s6 = scalar_lea.vmem [#allocation8], %s579_s19 }
  0x57   : > { %v311_v2 = vld [vmem:[%s258_s11 + $0x10] sm:$0xff]  ;;  %v610_v3 = vpack.c.bf16 %v310_v1, %v309_v0  ;;  %v312_v4 = vld [vmem:[%s258_s11 + $0x18] sm:$0xff]  ;;  %s434_s23 = sshll.u32 %s291_s6, 4  ;;  %s592_s18 = sshll.u32 %s827_s15, 8  ;;  %s1045_s23 = int_to_ptr.vmem [resolvable:$true] %s434_s23 }
  0x58   : > { %v307_v5 = vld [vmem:[%s249_s9] sm:$0xff]  ;;  %v614_v6 = vpack.c.bf16 %v312_v4, %v311_v2  ;;  %v308_v7 = vld [vmem:[%s249_s9 + $0x8] sm:$0xff]  ;;  %s295_s24 = scalar_select %p294_p13, %s827_s15, 2 }
  0x59   : > { %607 = vmatprep.mubr.msk.f32.mxu0 %vm315_vm0, %v307_v5  ;;  %611 = vmatprep.subr.bf16.mxu0 %v610_v3  ;;  %s1050_s5 = scalar_lea.hbm %s1101_s3, %s592_s18  ;;  %s418_s19 = scalar_lea.sflag [#allocation5], %s1025_s8 }
  0x5a   : > { %613 = vmatpush3.bf16.msra.mxu0 %v610_v3  ;;  %s299_s4 = scalar_lea.vmem %s1100_s2, %s295_s24  ;;  %s749_s22 = scalar_lea.vmem %s1045_s23, 256 }
  0x5b   : > { %615 = vmatprep.subr.bf16.mxu0 %v614_v6  ;;  %v584_v8 = vld [vmem:[%s299_s4] ss:$0 sm:$0xff]  ;;  %p750_p2 = scmp.ne.s32.totalorder %s1045_s23, %s749_s22  ;;  %p1112_p0 = scmp.ne.s32.totalorder %s1106_s25, 0 }
  0x5c   : > { %s841_s15 = smov [#allocation8]  }
  0x5d   : > { %p751_p12 = pnand %p750_p2, %p1112_p0  ;;  %s753_s9 = sshll.u32 %s841_s15, 4  ;;  %s754_s9 = int_to_ptr.vmem [resolvable:$false] %s753_s9 }
  0x5e   : > { %617 = vmatpush3.bf16.msra.mxu0 %v614_v6  ;;  %s755_s28 = scalar_lea.vmem %s754_s9, 512  ;;  %p756_p7 = scmp.lt.s32.totalorder %s1045_s23, %s754_s9 }
  0x5f   : > { %p752_p6 = pneg %p751_p12  ;;  %p757_p9 = scmp.lt.s32.totalorder %s755_s28, %s749_s22 }
  0x61   : > { %608 = vmatmul.mubr.msk.f32.vlgmr.msra.gmra.mrb[0].mxu0 %vm315_vm0, %v308_v7  ;;  %p758_p11 = por %p757_p9, %p756_p7 }
  0x63   : > { %p759_p5 = pnand %p758_p11, %p752_p6 }
 0x134   : > { %v609_v9 = vpop.f32.mrb[0].mxu0 }
 0x135   : > { %v414_v10 = vadd.f32 %v609_v9, %v584_v8  ;;  %v388_v11 = vpop.f32.mrb[1].mxu0 }
 0x136   : > { %v413_v12 = vadd.f32 %v584_v8, %v388_v11 }
 0x137   : > { %416 = vst [vmem:[%s291_s6 + $0x8] sm:$0xff] %v414_v10 }
 0x138   : > { %415 = vst [vmem:[%s291_s6] sm:$0xff] %v413_v12 }
 0x139   : > { %762 = shalt.err (!%p759_p5)
}
 0x13a   : > { %s763_s7 = scalar_lea.hbm %s1050_s5, 256  ;;  %s767_s21 = scalar_lea.hbm %s1101_s3, 768 }
 0x13b   : > { %p764_p10 = scmp.ne.s32.totalorder %s1050_s5, %s763_s7  ;;  %p768_p4 = scmp.lt.u32.totalorder %s1050_s5, %s1101_s3 }
 0x13c   : > { %p769_p8 = scmp.lt.u32.totalorder %s767_s21, %s763_s7  ;;  %p771_p2 = scmp.lt.u32.totalorder %s763_s7, %s1050_s5 }
 0x13d   : > { %p765_p1 = pnand %p764_p10, %p1112_p0 }
 0x13e   : > { %p770_p13 = por %p769_p8, %p768_p4 }
 0x13f   : > { %p766_p3 = pneg %p765_p1 }
 0x140   : > { %p772_p12 = por %p771_p2, %p770_p13 }
 0x142   : > { %p773_p6 = pnand %p772_p12, %p766_p3 }
 0x144   : > { %776 = shalt.err (!%p773_p6)
}
 0x145   : > { %s842_s6 = smov 128   ;;  %s843_s18 = smov 8  }
 0x146   : > { %622 = dma.vmem_to_hbm [thread:$0]  (%p1112_p0), %s1045_s23, 256, %s1050_s5, %s418_s19, %s842_s6, %s842_s6, %s843_s18  }
 0x147 PF: > { %p636_p7 = scmp.ge.s32.totalorder %s835_s17, 2  ;;  %s449_s30 = sand.u32 1, %s815_s12  }
 0x148   : > { %p1113_p9 = scmp.ne.s32.totalorder %s1107_s27, 0  ;;  %s450_s10 = scalar_lea.sflag [#allocation5], %s449_s30 }
 0x14a   : > { %p632_p11 = pnand %p636_p7, %p1113_p9 }
 0x14c   : > { %810 = dma.done.wait (!%p632_p11), %s450_s10, 256  }
 0x14d   : > { %812 = vsyncadd (!%p632_p11), %s450_s10, 4294967040  ;;  %s22_s17 = sadd.s32 1, %s835_s17   ;;  %s1114_s12 = smov %s819_s13 }
 0x14e   : > { %p19_p5 = scmp.ge.s32.totalorder %s22_s17, 5   ;;  %s1115_s13 = smov %s823_s14 }
 0x14f   : > { %s1116_s14 = smov %s920_s26  ;;  %s1117_s15 = smov %s831_s16 }
 0x150   : > { %s1118_s16 = smov %s1120_s20  ;;  %21 = sbr.rel (!%p19_p5) target bundleno = 8 (0x8), region = 101 }
 0x157   :  { %455 = vsyncpa [#allocation4], 1 }
 0x158   :  { %457 = vsyncpa [#allocation4 + $0x1], 1 }
 0x159   :  { %458 = vsyncpa [#allocation7], 1 }
 0x15a   :  { %460 = vsyncpa [#allocation7 + $0x1], 1 }
 0x15b   :  { %461 = vsyncpa [#allocation5], 1 }
 0x15c   :  { %463 = vsyncpa [#allocation5 + $0x1], 1 }

</bundles_post_ra>
